<compile_context>
chip_gen: v6e
topology: v6e:2x2x1
jax: 0.10.0
libtpu: 0.0.40
codegen_flags: <defaults>
</compile_context>

<pallas_src>
import jax
import jax.numpy as jnp
from jax.experimental import pallas as pl
from jax.experimental.pallas import tpu as pltpu

HIDDEN = 128        # hidden width (fixed by the PyTorch spec)
TB_CAP = 2048       # max batch tile; double-buffered activations stay ~3 MiB,
                    # safely inside the 32 MiB scoped VMEM on v5e/v6e/v7x
MIN_SPLIT_B = 1024  # force >=2 grid steps once B is this big (v7x: 2 TCs)


def _round_up(n, m):
    return (n + m - 1) // m * m


def _cdiv(a, b):
    return (a + b - 1) // b


def dqn_kernel(x_ref, w1_ref, b1_ref, w2_ref, b2_ref, w3_ref, b3_ref,
               out_ref, hidden_ref):
    # Layer 1: Linear(num_inputs -> 128) + ReLU.  K = num_inputs (unpadded);
    # the MXU pads small K internally, no HBM padding needed.
    h1 = jnp.dot(x_ref[...], w1_ref[...],
                 preferred_element_type=jnp.float32) + b1_ref[...]
    h1 = jnp.maximum(h1, 0.0)

    # Layer 2: Linear(128,128) -> this is the "hidden" the module returns.
    hidden = jnp.dot(h1, w2_ref[...],
                     preferred_element_type=jnp.float32) + b2_ref[...]
    hidden_ref[...] = hidden.astype(hidden_ref.dtype)

    # Head: Linear(128, num_actions) applied to ReLU(hidden).
    hr = jnp.maximum(hidden, 0.0)
    out = jnp.dot(hr, w3_ref[...],
                  preferred_element_type=jnp.float32) + b3_ref[...]
    out_ref[...] = out.astype(out_ref.dtype)


@jax.jit
def dqn_forward(x, params):
    """x: (B, num_inputs) f32.  params: dict of (in,out)-layout weights/biases.

    Returns (out, hidden) exactly like the PyTorch forward (return_latent='last'):
    out (B, num_actions), hidden (B, 128).
    """
    B, num_inputs = x.shape
    num_actions = params["w3"].shape[1]

    # ---- batch tiling -------------------------------------------------------
    # Big tiles (overhead amortization), bounded over-padding (TB derived from
    # B), and >=2 grid steps for large B so v7x's two TensorCores both work.
    n_tiles = max(1, _cdiv(B, TB_CAP))
    if B >= MIN_SPLIT_B:
        n_tiles = max(n_tiles, 2)
    TB = _round_up(_cdiv(B, n_tiles), 8)        # f32 sublane multiple
    B_pad = n_tiles * TB
    grid = (n_tiles,)

    # Only batch-row padding (cheap); feature dim stays at its true width.
    # NOTE: padded (zero) rows produce nonzero hidden/out rows (bias + ReLU
    # propagation); they are sliced off below and must never be read.
    if B_pad != B:
        x_in = jnp.pad(x, ((0, B_pad - B), (0, 0)))
    else:
        x_in = x

    w1 = params["w1"].astype(jnp.float32)                       # (num_inputs, 128)
    b1 = params["b1"].reshape(1, HIDDEN).astype(jnp.float32)
    w2 = params["w2"].astype(jnp.float32)                       # (128, 128)
    b2 = params["b2"].reshape(1, HIDDEN).astype(jnp.float32)
    w3 = params["w3"].astype(jnp.float32)                       # (128, num_actions)
    b3 = params["b3"].reshape(1, num_actions).astype(jnp.float32)

    # Batch-tiled activations; tiny weights/biases stay resident in VMEM via
    # constant index_maps.
    in_specs = [
        pl.BlockSpec((TB, num_inputs), lambda i: (i, 0)),        # x
        pl.BlockSpec((num_inputs, HIDDEN), lambda i: (0, 0)),    # w1
        pl.BlockSpec((1, HIDDEN), lambda i: (0, 0)),             # b1
        pl.BlockSpec((HIDDEN, HIDDEN), lambda i: (0, 0)),        # w2
        pl.BlockSpec((1, HIDDEN), lambda i: (0, 0)),             # b2
        pl.BlockSpec((HIDDEN, num_actions), lambda i: (0, 0)),   # w3
        pl.BlockSpec((1, num_actions), lambda i: (0, 0)),        # b3
    ]
    out_specs = (
        pl.BlockSpec((TB, num_actions), lambda i: (i, 0)),       # Q-values
        pl.BlockSpec((TB, HIDDEN), lambda i: (i, 0)),            # hidden
    )

    flops = 2 * B_pad * (num_inputs * HIDDEN + HIDDEN * HIDDEN
                         + HIDDEN * num_actions)
    bytes_accessed = 4 * (
        B_pad * num_inputs                 # x in
        + B_pad * HIDDEN                   # hidden out
        + B_pad * num_actions              # out
        + num_inputs * HIDDEN + HIDDEN * HIDDEN + HIDDEN * num_actions
        + 2 * HIDDEN + num_actions         # biases
    )

    out, hidden = pl.pallas_call(
        dqn_kernel,
        out_shape=(
            jax.ShapeDtypeStruct((B_pad, num_actions), jnp.float32),
            jax.ShapeDtypeStruct((B_pad, HIDDEN), jnp.float32),
        ),
        grid=grid,
        in_specs=in_specs,
        out_specs=out_specs,
        compiler_params=pltpu.CompilerParams(
            dimension_semantics=("parallel",),
            vmem_limit_bytes=32 * 1024 * 1024,
        ),
        cost_estimate=pl.CostEstimate(
            flops=flops, transcendentals=0, bytes_accessed=bytes_accessed),
    )(x_in, w1, b1, w2, b2, w3, b3)

    if B_pad != B:
        out, hidden = out[:B], hidden[:B]
    return out, hidden


def init_params(key, num_inputs, num_actions):
    """Deterministic synthetic init (PyTorch-style uniform ranges).

    Weights are stored (in_features, out_features) so the kernel computes x @ W.
    """
    ks = jax.random.split(key, 6)

    def lin(kw, kb, fan_in, fan_out):
        bound = 1.0 / jnp.sqrt(fan_in)
        w = jax.random.uniform(kw, (fan_in, fan_out), jnp.float32, -bound, bound)
        b = jax.random.uniform(kb, (fan_out,), jnp.float32, -bound, bound)
        return w, b

    w1, b1 = lin(ks[0], ks[1], num_inputs, HIDDEN)
    w2, b2 = lin(ks[2], ks[3], HIDDEN, HIDDEN)
    w3, b3 = lin(ks[4], ks[5], HIDDEN, num_actions)
    return {"w1": w1, "b1": b1, "w2": w2, "b2": b2, "w3": w3, "b3": b3}


def dqn_forward_ref(x, p):
    h1 = jnp.maximum(x @ p["w1"] + p["b1"], 0.0)
    hidden = h1 @ p["w2"] + p["b2"]
    out = jnp.maximum(hidden, 0.0) @ p["w3"] + p["b3"]
    return out, hidden


if __name__ == "__main__":
    key = jax.random.PRNGKey(0)
    k_param, k_x = jax.random.split(key)

    B, num_inputs, num_actions = 8, 32, 4
    params = init_params(k_param, num_inputs, num_actions)
    x = jax.random.normal(k_x, (B, num_inputs), jnp.float32)

    out, hidden = dqn_forward(x, params)
    out = jax.block_until_ready(out)
    hidden = jax.block_until_ready(hidden)

    out_ref, hidden_ref = dqn_forward_ref(x, params)
    assert out.shape == (B, num_actions) and hidden.shape == (B, HIDDEN)
    assert jnp.allclose(out, out_ref, atol=1e-5, rtol=1e-5)
    assert jnp.allclose(hidden, hidden_ref, atol=1e-5, rtol=1e-5)

    print("KERNEL_OK")
</pallas_src>

<mosaic_0001>
module attributes {stable_mosaic.version = 11 : i64} {
  func.func @dqn_kernel(%arg0: i32, %arg1: memref<8x32xf32, #tpu.memory_space<vmem>>, %arg2: memref<32x128xf32, #tpu.memory_space<vmem>>, %arg3: memref<1x128xf32, #tpu.memory_space<vmem>>, %arg4: memref<128x128xf32, #tpu.memory_space<vmem>>, %arg5: memref<1x128xf32, #tpu.memory_space<vmem>>, %arg6: memref<128x4xf32, #tpu.memory_space<vmem>>, %arg7: memref<1x4xf32, #tpu.memory_space<vmem>>, %arg8: memref<8x4xf32, #tpu.memory_space<vmem>>, %arg9: memref<8x128xf32, #tpu.memory_space<vmem>>) attributes {dimension_semantics = [#tpu.dimension_semantics<parallel>], iteration_bounds = array<i64: 1>, scalar_prefetch = 0 : i64, scratch_operands = 0 : i64, tpu.core_type = #tpu.core_type<tc>, window_params = [{transform_indices = @transform_0, window_bounds = array<i64: 8, 32>}, {pipeline_mode = #tpu.pipeline_mode<synchronous>, transform_indices = @transform_1, window_bounds = array<i64: 32, 128>}, {pipeline_mode = #tpu.pipeline_mode<synchronous>, transform_indices = @transform_2, window_bounds = array<i64: 1, 128>}, {pipeline_mode = #tpu.pipeline_mode<synchronous>, transform_indices = @transform_3, window_bounds = array<i64: 128, 128>}, {pipeline_mode = #tpu.pipeline_mode<synchronous>, transform_indices = @transform_4, window_bounds = array<i64: 1, 128>}, {pipeline_mode = #tpu.pipeline_mode<synchronous>, transform_indices = @transform_5, window_bounds = array<i64: 128, 4>}, {pipeline_mode = #tpu.pipeline_mode<synchronous>, transform_indices = @transform_6, window_bounds = array<i64: 1, 4>}, {transform_indices = @transform_7, window_bounds = array<i64: 8, 4>}, {transform_indices = @transform_8, window_bounds = array<i64: 8, 128>}]} {
    %c0 = arith.constant 0 : index
    %c0_0 = arith.constant 0 : index
    %0 = vector.load %arg1[%c0, %c0_0] : memref<8x32xf32, #tpu.memory_space<vmem>>, vector<8x32xf32>
    %c0_1 = arith.constant 0 : index
    %c0_2 = arith.constant 0 : index
    %1 = vector.load %arg2[%c0_1, %c0_2] : memref<32x128xf32, #tpu.memory_space<vmem>>, vector<32x128xf32>
    %cst = arith.constant dense<0.000000e+00> : vector<8x128xf32>
    %2 = tpu.matmul %0, %1, %cst {dimension_numbers = #tpu.dot_dimension_numbers<[1], [0], [0], [1], [0, 0, 1, 1], [], []>} : vector<8x32xf32>, vector<32x128xf32>, vector<8x128xf32> -> vector<8x128xf32>
    %c0_3 = arith.constant 0 : index
    %c0_4 = arith.constant 0 : index
    %3 = vector.load %arg3[%c0_3, %c0_4] : memref<1x128xf32, #tpu.memory_space<vmem>>, vector<1x128xf32>
    %4 = vector.broadcast %3 : vector<1x128xf32> to vector<8x128xf32>
    %5 = arith.addf %2, %4 : vector<8x128xf32>
    %cst_5 = arith.constant 0.000000e+00 : f32
    %6 = vector.broadcast %cst_5 : f32 to vector<8x128xf32>
    %7 = arith.maximumf %5, %6 : vector<8x128xf32>
    %c0_6 = arith.constant 0 : index
    %c0_7 = arith.constant 0 : index
    %8 = vector.load %arg4[%c0_6, %c0_7] : memref<128x128xf32, #tpu.memory_space<vmem>>, vector<128x128xf32>
    %cst_8 = arith.constant dense<0.000000e+00> : vector<8x128xf32>
    %9 = tpu.matmul %7, %8, %cst_8 {dimension_numbers = #tpu.dot_dimension_numbers<[1], [0], [0], [1], [0, 0, 1, 1], [], []>} : vector<8x128xf32>, vector<128x128xf32>, vector<8x128xf32> -> vector<8x128xf32>
    %c0_9 = arith.constant 0 : index
    %c0_10 = arith.constant 0 : index
    %10 = vector.load %arg5[%c0_9, %c0_10] : memref<1x128xf32, #tpu.memory_space<vmem>>, vector<1x128xf32>
    %11 = vector.broadcast %10 : vector<1x128xf32> to vector<8x128xf32>
    %12 = arith.addf %9, %11 : vector<8x128xf32>
    %c0_11 = arith.constant 0 : index
    %c0_12 = arith.constant 0 : index
    %13 = vector.load %arg9[%c0_11, %c0_12] : memref<8x128xf32, #tpu.memory_space<vmem>>, vector<8x128xf32>
    tpu.vector_store %arg9[%c0_11, %c0_12], %12 {strides = array<i32>} : memref<8x128xf32, #tpu.memory_space<vmem>>, vector<8x128xf32>,
    %cst_13 = arith.constant 0.000000e+00 : f32
    %14 = vector.broadcast %cst_13 : f32 to vector<8x128xf32>
    %15 = arith.maximumf %12, %14 : vector<8x128xf32>
    %c0_14 = arith.constant 0 : index
    %c0_15 = arith.constant 0 : index
    %16 = vector.load %arg6[%c0_14, %c0_15] : memref<128x4xf32, #tpu.memory_space<vmem>>, vector<128x4xf32>
    %cst_16 = arith.constant dense<0.000000e+00> : vector<8x4xf32>
    %17 = tpu.matmul %15, %16, %cst_16 {dimension_numbers = #tpu.dot_dimension_numbers<[1], [0], [0], [1], [0, 0, 1, 1], [], []>} : vector<8x128xf32>, vector<128x4xf32>, vector<8x4xf32> -> vector<8x4xf32>
    %c0_17 = arith.constant 0 : index
    %c0_18 = arith.constant 0 : index
    %18 = vector.load %arg7[%c0_17, %c0_18] : memref<1x4xf32, #tpu.memory_space<vmem>>, vector<1x4xf32>
    %19 = vector.broadcast %18 : vector<1x4xf32> to vector<8x4xf32>
    %20 = arith.addf %17, %19 : vector<8x4xf32>
    %c0_19 = arith.constant 0 : index
    %c0_20 = arith.constant 0 : index
    %21 = vector.load %arg8[%c0_19, %c0_20] : memref<8x4xf32, #tpu.memory_space<vmem>>, vector<8x4xf32>
    tpu.vector_store %arg8[%c0_19, %c0_20], %20 {strides = array<i32>} : memref<8x4xf32, #tpu.memory_space<vmem>>, vector<8x4xf32>,
    return
  }
  func.func @transform_0(%arg0: i32) -> (i32, i32) {
    %c0_i32 = arith.constant 0 : i32
    %c0_i32_0 = arith.constant 0 : i32
    return %arg0, %c0_i32 : i32, i32
  }
  func.func @transform_1(%arg0: i32) -> (i32, i32) {
    %c0_i32 = arith.constant 0 : i32
    %c0_i32_0 = arith.constant 0 : i32
    %c0_i32_1 = arith.constant 0 : i32
    return %c0_i32, %c0_i32_0 : i32, i32
  }
  func.func @transform_2(%arg0: i32) -> (i32, i32) {
    %c0_i32 = arith.constant 0 : i32
    %c0_i32_0 = arith.constant 0 : i32
    %c0_i32_1 = arith.constant 0 : i32
    return %c0_i32, %c0_i32_0 : i32, i32
  }
  func.func @transform_3(%arg0: i32) -> (i32, i32) {
    %c0_i32 = arith.constant 0 : i32
    %c0_i32_0 = arith.constant 0 : i32
    %c0_i32_1 = arith.constant 0 : i32
    return %c0_i32, %c0_i32_0 : i32, i32
  }
  func.func @transform_4(%arg0: i32) -> (i32, i32) {
    %c0_i32 = arith.constant 0 : i32
    %c0_i32_0 = arith.constant 0 : i32
    %c0_i32_1 = arith.constant 0 : i32
    return %c0_i32, %c0_i32_0 : i32, i32
  }
  func.func @transform_5(%arg0: i32) -> (i32, i32) {
    %c0_i32 = arith.constant 0 : i32
    %c0_i32_0 = arith.constant 0 : i32
    %c0_i32_1 = arith.constant 0 : i32
    return %c0_i32, %c0_i32_0 : i32, i32
  }
  func.func @transform_6(%arg0: i32) -> (i32, i32) {
    %c0_i32 = arith.constant 0 : i32
    %c0_i32_0 = arith.constant 0 : i32
    %c0_i32_1 = arith.constant 0 : i32
    return %c0_i32, %c0_i32_0 : i32, i32
  }
  func.func @transform_7(%arg0: i32) -> (i32, i32) {
    %c0_i32 = arith.constant 0 : i32
    %c0_i32_0 = arith.constant 0 : i32
    return %arg0, %c0_i32 : i32, i32
  }
  func.func @transform_8(%arg0: i32) -> (i32, i32) {
    %c0_i32 = arith.constant 0 : i32
    %c0_i32_0 = arith.constant 0 : i32
    return %arg0, %c0_i32 : i32, i32
  }
}

</mosaic_0001>

<bundles_post_ra>
// kernel: dqn_forward.1
= control target key start
LH: loop header
LB: loop body
LE: loop exit
PB: predicated region body
PF: predicated region fallthrough
CT: control target
= control target key end

     0   :  { %14 = vsyncpa [#allocation3], 0  ;;  %s723_s0 = inlined_call_operand.vmem [shape: f32[8,32], index: 0, kind: input, shape index: {}]   ;;  %s724_s1 = inlined_call_operand.hbm [shape: f32[32,128], index: 1, kind: input, shape index: {}]   ;;  %s725_s2 = inlined_call_operand.vmem [shape: f32[1,128], index: 2, kind: input, shape index: {}]   ;;  %s726_s3 = inlined_call_operand.vmem [shape: f32[128,128], index: 3, kind: input, shape index: {}]   ;;  %s727_s4 = inlined_call_operand.vmem [shape: f32[1,128], index: 4, kind: input, shape index: {}]   ;;  %s728_s5 = inlined_call_operand.vmem [shape: f32[128,4], index: 5, kind: input, shape index: {}]   ;;  %s729_s6 = inlined_call_operand.vmem [shape: f32[1,4], index: 6, kind: input, shape index: {}]   ;;  %s730_s7 = inlined_call_operand.vmem [shape: f32[8,4], index: 7, kind: output, shape index: {0}]   ;;  %s731_s8 = inlined_call_operand.hbm [shape: f32[8,128], index: 8, kind: output, shape index: {1}]  }
   0x1   :  { %15 = vsyncpa [#allocation4], 0  ;;  %s513_s27 = smov [#allocation2]  }
   0x2   :  { %s23_s28 = sshll.u32 %s513_s27, 4  ;;  %s24_s28 = int_to_ptr.vmem [resolvable:$true] %s23_s28 }
   0x3   :  { %s477_s29 = scalar_lea.vmem %s24_s28, 512  ;;  %p482_p1 = scmp.lt.s32.totalorder %s24_s28, %s24_s28 }
   0x4   :  { %p478_p0 = scmp.ne.s32.totalorder %s24_s28, %s477_s29  ;;  %p483_p2 = scmp.lt.s32.totalorder %s477_s29, %s477_s29 }
   0x6   :  { %p484_p3 = por %p483_p2, %p482_p1 }
   0x8   :  { %p485_p4 = pnand %p484_p3, %p478_p0 }
   0xa   :  { %488 = shalt.err (!%p485_p4)
}
   0xb   :  { %s514_s30 = smov 128   ;;  %s515_s9 = smov 8  }
   0xc   :  { %29 = dma.hbm_to_vmem [thread:$0]  %s724_s1, 512, %s24_s28, [#allocation3], %s514_s30, %s514_s30, %s515_s9  }
   0xd   :  { %509 = dma.done.wait [#allocation3], 512  }
   0xe   :  { %510 = vsyncadd [#allocation3], 4294966784  ;;  %v516_v0 = vmov 0.0   ;;  %vm517_vm0 = vmmov 0   ;;  %v47_v1 = vld [vmem:[#allocation2 + $0x18] sm:$0xff]  ;;  %v46_v2 = vld [vmem:[#allocation2 + $0x10] sm:$0xff] }
   0xf   :  { %382 = vmatprep.subr.mxu0 %v516_v0  ;;  %390 = vmatprep.mubr.msk.f32.mxu0 %vm517_vm0, %v516_v0  ;;  %v145_v3 = vld [vmem:[%s726_s3 + $0x78] sm:$0xff]  ;;  %v45_v4 = vld [vmem:[#allocation2 + $0x8] sm:$0xff]  ;;  %v144_v5 = vld [vmem:[%s726_s3 + $0x70] sm:$0xff]  ;;  %vm55_vm1 = vcmask 261120   ;;  %s518_s29 = smov [#allocation5]  }
  0x10   :  { %393 = vmatprep.subr.mxu1 %v516_v0  ;;  %425 = vmatprep.mubr.msk.f32.mxu1 %vm517_vm0, %v516_v0  ;;  %v143_v6 = vld [vmem:[%s726_s3 + $0x68] sm:$0xff]  ;;  %v44_v7 = vld [vmem:[#allocation2] sm:$0xff]  ;;  %v141_v10 = vld [vmem:[%s726_s3 + $0x58] sm:$0xff]  ;;  %s328_s30 = sshll.u32 %s518_s29, 4  ;;  %s329_s30 = int_to_ptr.vmem [resolvable:$true] %s328_s30 }
  0x11   :  { %383 = vmatpush3.msra.mxu0 %v47_v1  ;;  %394 = vmatpush3.msra.mxu1 %v145_v3  ;;  %v43_v8 = vld [vmem:[%s723_s0] sm:$0xff]  ;;  %v140_v11 = vld [vmem:[%s726_s3 + $0x50] sm:$0xff]  ;;  %v139_v12 = vld [vmem:[%s726_s3 + $0x48] sm:$0xff]  ;;  %s489_s9 = scalar_lea.vmem %s329_s30, 128  ;;  %p494_p6 = scmp.lt.s32.totalorder %s329_s30, %s329_s30 }
  0x12   :  { %384 = vmatprep.subr.mxu0 %v516_v0  ;;  %395 = vmatprep.subr.mxu1 %v516_v0  ;;  %v142_v9 = vld [vmem:[%s726_s3 + $0x60] sm:$0xff]  ;;  %v137_v14 = vld [vmem:[%s726_s3 + $0x38] sm:$0xff]  ;;  %v136_v15 = vld [vmem:[%s726_s3 + $0x30] sm:$0xff]  ;;  %p490_p5 = scmp.ne.s32.totalorder %s329_s30, %s489_s9  ;;  %p495_p7 = scmp.lt.s32.totalorder %s489_s9, %s489_s9 }
  0x13   :  { %385 = vmatpush3.msra.mxu0 %v46_v2  ;;  %396 = vmatpush3.msra.mxu1 %v144_v5  ;;  %v138_v13 = vld [vmem:[%s726_s3 + $0x40] sm:$0xff]  ;;  %v135_v16 = vld [vmem:[%s726_s3 + $0x28] sm:$0xff]  ;;  %v133_v18 = vld [vmem:[%s726_s3 + $0x18] sm:$0xff] }
  0x14   :  { %386 = vmatprep.subr.mxu0 %v516_v0  ;;  %397 = vmatprep.subr.mxu1 %v516_v0  ;;  %v134_v17 = vld [vmem:[%s726_s3 + $0x20] sm:$0xff]  ;;  %v132_v19 = vld [vmem:[%s726_s3 + $0x10] sm:$0xff]  ;;  %v131_v20 = vld [vmem:[%s726_s3 + $0x8] sm:$0xff]  ;;  %p496_p8 = por %p495_p7, %p494_p6 }
  0x15   :  { %387 = vmatpush3.msra.mxu0 %v45_v4  ;;  %398 = vmatpush3.msra.mxu1 %v143_v6  ;;  %v130_v21 = vld [vmem:[%s726_s3] sm:$0xff]  ;;  %v240_v22 = vld [vmem:[%s728_s5 + $0x78] sm:$0xff]  ;;  %v239_v23 = vld [vmem:[%s728_s5 + $0x70] sm:$0xff] }
  0x16   :  { %388 = vmatprep.subr.mxu0 %v516_v0  ;;  %399 = vmatprep.subr.mxu1 %v516_v0  ;;  %v238_v24 = vld [vmem:[%s728_s5 + $0x68] sm:$0xff]  ;;  %v237_v25 = vld [vmem:[%s728_s5 + $0x60] sm:$0xff]  ;;  %v236_v26 = vld [vmem:[%s728_s5 + $0x58] sm:$0xff]  ;;  %p497_p9 = pnand %p496_p8, %p490_p5 }
  0x17   :  { %389 = vmatpush3.msra.mxu0 %v44_v7  ;;  %400 = vmatpush3.msra.mxu1 %v142_v9  ;;  %v235_v27 = vld [vmem:[%s728_s5 + $0x50] sm:$0xff]  ;;  %v234_v28 = vld [vmem:[%s728_s5 + $0x48] sm:$0xff]  ;;  %v233_v29 = vld [vmem:[%s728_s5 + $0x40] sm:$0xff] }
  0x18   :  { %391 = vmatmul.mubr.msk.f32.vlgmr.msra.gmra.mxu0 %vm55_vm1, %v43_v8  ;;  %401 = vmatprep.subr.mxu1 %v516_v0  ;;  %v232_v30 = vld [vmem:[%s728_s5 + $0x38] sm:$0xff]  ;;  %v231_v31 = vld [vmem:[%s728_s5 + $0x30] sm:$0xff]  ;;  %v230_v32 = vld [vmem:[%s728_s5 + $0x28] sm:$0xff] }
  0x19   :  { %428 = vmatprep.subr.mxu0 %v516_v0  ;;  %402 = vmatpush3.msra.mxu1 %v141_v10  ;;  %v229_v33 = vld [vmem:[%s728_s5 + $0x20] sm:$0xff]  ;;  %v228_v34 = vld [vmem:[%s728_s5 + $0x18] sm:$0xff]  ;;  %v227_v40 = vld [vmem:[%s728_s5 + $0x10] sm:$0xff] }
  0x1a   :  { %460 = vmatprep.mubr.msk.f32.mxu0 %vm517_vm0, %v516_v0  ;;  %403 = vmatprep.subr.mxu1 %v516_v0  ;;  %v339_v35 = vld [vmem:[%s725_s2] ss:$0 sm:$0xff]  ;;  %v226_v41 = vld [vmem:[%s728_s5 + $0x8] sm:$0xff] }
  0x1b   :  { %404 = vmatpush3.msra.mxu1 %v140_v11  ;;  %429 = vmatpush3.msra.mxu0 %v240_v22  ;;  %v225_v42 = vld [vmem:[%s728_s5] sm:$0xff] }
  0x1c   :  { %405 = vmatprep.subr.mxu1 %v516_v0  ;;  %430 = vmatprep.subr.mxu0 %v516_v0  ;;  %v341_v43 = vld [vmem:[%s727_s4] ss:$0 sm:$0xff] }
  0x1d   :  { %406 = vmatpush3.msra.mxu1 %v139_v12  ;;  %431 = vmatpush3.msra.mxu0 %v239_v23 }
  0x1e   :  { %407 = vmatprep.subr.mxu1 %v516_v0  ;;  %432 = vmatprep.subr.mxu0 %v516_v0 }
  0x1f   :  { %408 = vmatpush3.msra.mxu1 %v138_v13  ;;  %433 = vmatpush3.msra.mxu0 %v238_v24 }
  0x20   :  { %409 = vmatprep.subr.mxu1 %v516_v0  ;;  %434 = vmatprep.subr.mxu0 %v516_v0 }
  0x21   :  { %410 = vmatpush3.msra.mxu1 %v137_v14  ;;  %435 = vmatpush3.msra.mxu0 %v237_v25 }
  0x22   :  { %411 = vmatprep.subr.mxu1 %v516_v0  ;;  %436 = vmatprep.subr.mxu0 %v516_v0 }
  0x23   :  { %412 = vmatpush3.msra.mxu1 %v136_v15  ;;  %437 = vmatpush3.msra.mxu0 %v236_v26 }
  0x24   :  { %413 = vmatprep.subr.mxu1 %v516_v0  ;;  %438 = vmatprep.subr.mxu0 %v516_v0 }
  0x25   :  { %414 = vmatpush3.msra.mxu1 %v135_v16  ;;  %439 = vmatpush3.msra.mxu0 %v235_v27 }
  0x26   :  { %415 = vmatprep.subr.mxu1 %v516_v0  ;;  %440 = vmatprep.subr.mxu0 %v516_v0 }
  0x27   :  { %416 = vmatpush3.msra.mxu1 %v134_v17  ;;  %441 = vmatpush3.msra.mxu0 %v234_v28 }
  0x28   :  { %417 = vmatprep.subr.mxu1 %v516_v0  ;;  %442 = vmatprep.subr.mxu0 %v516_v0 }
  0x29   :  { %418 = vmatpush3.msra.mxu1 %v133_v18  ;;  %443 = vmatpush3.msra.mxu0 %v233_v29 }
  0x2a   :  { %419 = vmatprep.subr.mxu1 %v516_v0  ;;  %444 = vmatprep.subr.mxu0 %v516_v0 }
  0x2b   :  { %420 = vmatpush3.msra.mxu1 %v132_v19  ;;  %445 = vmatpush3.msra.mxu0 %v232_v30 }
  0x2c   :  { %421 = vmatprep.subr.mxu1 %v516_v0  ;;  %446 = vmatprep.subr.mxu0 %v516_v0 }
  0x2d   :  { %422 = vmatpush3.msra.mxu1 %v131_v20  ;;  %447 = vmatpush3.msra.mxu0 %v231_v31 }
  0x2e   :  { %423 = vmatprep.subr.mxu1 %v516_v0  ;;  %448 = vmatprep.subr.mxu0 %v516_v0 }
  0x2f   :  { %424 = vmatpush3.msra.mxu1 %v130_v21  ;;  %449 = vmatpush3.msra.mxu0 %v230_v32 }
  0x30   :  { %450 = vmatprep.subr.mxu0 %v516_v0 }
  0x31   :  { %451 = vmatpush3.msra.mxu0 %v229_v33 }
  0x32   :  { %452 = vmatprep.subr.mxu0 %v516_v0 }
  0x33   :  { %453 = vmatpush3.msra.mxu0 %v228_v34 }
  0x34   :  { %454 = vmatprep.subr.mxu0 %v516_v0 }
  0x35   :  { %455 = vmatpush3.msra.mxu0 %v227_v40 }
  0x36   :  { %456 = vmatprep.subr.mxu0 %v516_v0 }
  0x37   :  { %457 = vmatpush3.msra.mxu0 %v226_v41 }
  0x38   :  { %458 = vmatprep.subr.mxu0 %v516_v0 }
  0x39   :  { %459 = vmatpush3.msra.mxu0 %v225_v42 }
  0xd8   :  { %v125_v36 = vpop.f32.mrf.mxu0 }
  0xd9   :  { %v126_v37 = vadd.f32 %v339_v35, %v125_v36 }
  0xda   :  { %v392_v38 = vpop.f32.mrf.mxu0 }
  0xdb   :  { %v129_v39 = vmax.f32 %v126_v37, 0.0 }
  0xdd   :  { %426 = vmatmul.mubr.f32.vlgmr.msra.gmra.mxu1 %v129_v39 }
 0x19d   :  { %v219_v44 = vpop.f32.mrf.mxu1 }
 0x19e   :  { %v220_v45 = vadd.f32 %v341_v43, %v219_v44 }
 0x19f   :  { %v427_v46 = vpop.f32.mrf.mxu1 }
 0x1a0   :  { %v224_v47 = vmax.f32 %v220_v45, 0.0  ;;  %223 = vst [vmem:[#allocation5] sm:$0xff] %v220_v45 }
 0x1a2   :  { %461 = vmatmul.mubr.f32.vlgmr.msra.gmra.mxu0 %v224_v47 }
 0x1a3   :  { %500 = shalt.err (!%p497_p9)
}
 0x1a4   :  { %331 = dma.vmem_to_hbm [thread:$0]  %s329_s30, 128, %s731_s8, [#allocation4]   ;;  %v342_v48 = vld [vmem:[%s729_s6] ss:$0 sm:$0xff]  ;;  %vm318_vm2 = vcmask 31744  }
 0x262   :  { %v314_v49 = vpop.f32.mrf.mxu0 }
 0x263   :  { %v315_v50 = vadd.f32 %v342_v48, %v314_v49 }
 0x264   :  { %v462_v51 = vpop.f32.mrf.mxu0 }
 0x265   :  { %319 = vst.msk [vmem:[%s730_s7] sm:$0xff] %vm318_vm2, %v315_v50 }
 0x266   :  { %511 = dma.done.wait [#allocation4], 128  }
 0x267   :  { %512 = vsyncadd [#allocation4], 4294967168 }
 0x268   :  { %337 = vsyncpa [#allocation3], 1 }
 0x269   :  { %338 = vsyncpa [#allocation4], 1 }

</bundles_post_ra>
